<compile_context>
chip_gen: v6e
topology: v6e:2x2x1
jax: 0.10.0
libtpu: 0.0.40
codegen_flags: <defaults>
</compile_context>

<pallas_src>
import functools
import numpy as np
import jax
import jax.numpy as jnp
from jax import lax
from jax.experimental import pallas as pl
from jax.experimental.pallas import tpu as pltpu


# ---------------------------------------------------------------------------
# Shared layernorm helper (used inside the kernel and in the pure-JAX ref).
# ---------------------------------------------------------------------------
def _layernorm(z, gamma, beta, eps=1e-5):
    mu = jnp.mean(z, axis=-1, keepdims=True)
    var = jnp.mean((z - mu) ** 2, axis=-1, keepdims=True)
    return (z - mu) * lax.rsqrt(var + eps) * gamma + beta


# ---------------------------------------------------------------------------
# Pallas kernel: one encoder block, grid = (batch_blocks, heads).
#   head axis ("arbitrary") accumulates the attention output into acc_ref;
#   AddNorm1 + FFN + AddNorm2 run once at the last head step.
# ---------------------------------------------------------------------------
def encoder_block_kernel(seq_len,
                         vl_ref, x_ref,
                         wqkv_ref, bqkv_ref, wo_ref, bo_ref,
                         g1_ref, be1_ref, w1_ref, b1_ref,
                         w2_ref, b2_ref, g2_ref, be2_ref,
                         o_ref, acc_ref):
    M, H = x_ref.shape                  # M = Bb * T residual-stream rows (bf16)
    T = seq_len
    Bb = M // T
    hd = wo_ref.shape[0]                # per-head width
    h = pl.program_id(1)
    nh = pl.num_programs(1)

    xb = x_ref[...]                     # (M, H) bf16 residual stream

    # ---- init accumulator with residual + output-projection bias -----------
    @pl.when(h == 0)
    def _():
        acc_ref[...] = xb.astype(jnp.float32) + bo_ref[...]

    # ---- this head's fused QKV projection (scale folded into Q columns) ----
    qkv = jnp.dot(xb, wqkv_ref[...], preferred_element_type=jnp.float32)
    qkv = (qkv + bqkv_ref[...]).reshape(Bb, T, 3 * hd)        # (Bb, T, 3*hd)
    q = qkv[:, :, 0 * hd:1 * hd].astype(jnp.bfloat16)
    k = qkv[:, :, 1 * hd:2 * hd].astype(jnp.bfloat16)
    v = qkv[:, :, 2 * hd:3 * hd].astype(jnp.bfloat16)

    # ---- masked softmax(q k^T) v for this head ------------------------------
    s = jnp.einsum("bqd,bkd->bqk", q, k,
                   preferred_element_type=jnp.float32)        # (Bb, T, T)
    key_idx = lax.broadcasted_iota(jnp.int32, (1, 1, T), 2)
    s = jnp.where(key_idx < vl_ref[...], s, -1000000.0)       # masked_softmax fill
    s = s - jnp.max(s, axis=-1, keepdims=True)
    p = jnp.exp(s)
    p = p * pl.reciprocal(jnp.sum(p, axis=-1, keepdims=True), approx=True)
    ctx = jnp.einsum("bqk,bkd->bqd", p.astype(jnp.bfloat16), v,
                     preferred_element_type=jnp.float32)      # (Bb, T, hd)

    # ---- multi-head "merge" as an accumulated output projection -------------
    acc_ref[...] += jnp.dot(ctx.reshape(M, hd).astype(jnp.bfloat16), wo_ref[...],
                            preferred_element_type=jnp.float32)

    # ---- finalize: AddNorm1 + position-wise FFN + AddNorm2 -------------------
    @pl.when(h == nh - 1)
    def _():
        y = _layernorm(acc_ref[...], g1_ref[...], be1_ref[...])
        h1 = jnp.dot(y.astype(jnp.bfloat16), w1_ref[...],
                     preferred_element_type=jnp.float32) + b1_ref[...]
        h1 = jnp.maximum(h1, 0.0)
        f = jnp.dot(h1.astype(jnp.bfloat16), w2_ref[...],
                    preferred_element_type=jnp.float32) + b2_ref[...]
        o_ref[...] = _layernorm(y + f, g2_ref[...], be2_ref[...]).astype(o_ref.dtype)


_PACKED_ORDER = ("wqkv3", "bqkv3", "wo3", "bo", "g1", "be1",
                 "w1", "b1", "w2", "b2", "g2", "be2")


# ---------------------------------------------------------------------------
# One-time parameter transform: per-head weight layout, 1/sqrt(hd) folded into
# the Q columns/bias, matmul weights cast to bf16.  (Host-side JAX, not in the
# kernel.)
# ---------------------------------------------------------------------------
def pack_block_params(blk, num_heads):
    H = blk["wq"].shape[0]
    nh = num_heads
    hd = H // nh
    scale = float(1.0 / np.sqrt(hd))

    def per_head_cols(w, s=1.0):
        # (H, H) -> (nh, H, hd); head h gets columns [h*hd, (h+1)*hd).
        return (w * s).reshape(H, nh, hd).transpose(1, 0, 2)

    def per_head_bias(b, s=1.0):
        return (b * s).reshape(nh, 1, hd)          # b is (1, H)

    wqkv3 = jnp.concatenate(
        [per_head_cols(blk["wq"], scale), per_head_cols(blk["wk"]),
         per_head_cols(blk["wv"])], axis=-1).astype(jnp.bfloat16)   # (nh, H, 3*hd)
    bqkv3 = jnp.concatenate(
        [per_head_bias(blk["bq"], scale), per_head_bias(blk["bk"]),
         per_head_bias(blk["bv"])], axis=-1)                        # (nh, 1, 3*hd) f32
    wo3 = blk["wo"].reshape(nh, hd, H).astype(jnp.bfloat16)          # (nh, hd, H)

    return {
        "wqkv3": wqkv3, "bqkv3": bqkv3, "wo3": wo3, "bo": blk["bo"],
        "g1": blk["g1"], "be1": blk["be1"],
        "w1": blk["w1"].astype(jnp.bfloat16), "b1": blk["b1"],
        "w2": blk["w2"].astype(jnp.bfloat16), "b2": blk["b2"],
        "g2": blk["g2"], "be2": blk["be2"],
    }


def pack_params(params, num_heads):
    return {
        "tok_emb": params["tok_emb"],
        "seg_emb": params["seg_emb"],
        "pos_emb": params["pos_emb"],
        "blocks": [pack_block_params(blk, num_heads) for blk in params["blocks"]],
    }


# ---------------------------------------------------------------------------
# Generation-aware sizing helpers.
# ---------------------------------------------------------------------------
def _vmem_capacity_bytes():
    try:
        return int(pltpu.get_tpu_info().vmem_capacity_bytes)
    except Exception:
        return 64 << 20     # conservative floor (v7x per-core VMEM)


def _pick_batch_block(B, T):
    cap = _vmem_capacity_bytes()
    # v6e (128 MiB VMEM): bigger M per step; v5e/v7x: ~256 rows is enough.
    target_rows = 512 if cap >= (100 << 20) else 256
    Bb = max(1, min(B, target_rows // max(T, 1)))
    # Keep >= 2 steps on the parallel axis (v7x: 2 TensorCores), divisibility,
    # and the (8,128) sublane rule on the (Bb*T, H) activation block.
    while Bb > 1 and (B % Bb or B // Bb < 2 or (Bb * T) % 8):
        Bb -= 1
    return Bb


def _vmem_limit_bytes(Bb, T, H, F, hd):
    M = Bb * T
    bf, f4 = 2, 4
    streamed = 2 * (H * 3 * hd * bf + 3 * hd * f4 + hd * H * bf)   # per-head weights, 2-buffered
    resident = (H * F + F * H) * bf + (7 * H + F) * f4             # single-buffered weights + vectors
    acts = (2 * 2 * M * H * bf                                     # in/out activation blocks
            + M * H * f4                                           # f32 accumulator scratch
            + M * (3 * hd + 3 * H + 2 * F) * f4                    # qkv / y / FFN temporaries
            + 2 * Bb * T * T * f4)                                 # scores + probs (one head)
    need = streamed + resident + acts
    cap = _vmem_capacity_bytes()
    return int(min(cap - (8 << 20), max(2 * need + (4 << 20), 32 << 20)))


# ---------------------------------------------------------------------------
# pallas_call wrapper for one encoder block.
# ---------------------------------------------------------------------------
def encoder_block_pallas(x2d, vl3, packed, num_heads, seq_len, batch_block):
    BT, H = x2d.shape
    T = seq_len
    B = BT // T
    Bb = batch_block
    nh = num_heads
    hd = H // nh
    F = packed["w1"].shape[1]
    assert B % Bb == 0
    assert (Bb * T) % 8 == 0 or Bb == B, "activation block violates (8,128) sublane rule"
    grid = (B // Bb, nh)

    def packed_spec(name):
        arr = packed[name]
        if name in ("wqkv3", "bqkv3", "wo3"):
            # Per-head slice streamed along the inner ("arbitrary") head axis;
            # head split happens in the DMA pipeline, not in vregs.
            return pl.BlockSpec((None,) + arr.shape[1:], lambda i, h: (h, 0, 0))
        if name in ("w1", "w2"):
            # Constant-index full-size weights: fetched once, single-buffered.
            return pl.BlockSpec(arr.shape, lambda i, h: (0, 0),
                                pipeline_mode=pl.Buffered(1))
        return pl.BlockSpec(arr.shape, lambda i, h: (0, 0))

    in_specs = [
        pl.BlockSpec((Bb, 1, 1), lambda i, h: (i, 0, 0)),     # valid_lens
        pl.BlockSpec((Bb * T, H), lambda i, h: (i, 0)),       # bf16 residual rows
    ] + [packed_spec(n) for n in _PACKED_ORDER]

    out_specs = pl.BlockSpec((Bb * T, H), lambda i, h: (i, 0))

    grid_spec = pltpu.PrefetchScalarGridSpec(
        num_scalar_prefetch=0,
        grid=grid,
        in_specs=in_specs,
        out_specs=out_specs,
        scratch_shapes=[pltpu.VMEM((Bb * T, H), jnp.float32)],  # attention accumulator
    )

    return pl.pallas_call(
        functools.partial(encoder_block_kernel, T),
        out_shape=jax.ShapeDtypeStruct((BT, H), jnp.bfloat16),
        grid_spec=grid_spec,
        compiler_params=pltpu.CompilerParams(
            dimension_semantics=("parallel", "arbitrary"),
            vmem_limit_bytes=_vmem_limit_bytes(Bb, T, H, F, hd),
        ),
    )(vl3, x2d, *[packed[name] for name in _PACKED_ORDER])


# ---------------------------------------------------------------------------
# BERTEncoder forward (embedding glue in plain JAX, blocks in Pallas).
# ---------------------------------------------------------------------------
def bert_encoder_forward(tokens, segments, valid_lens, packed_params, num_heads):
    B, T = tokens.shape
    H = packed_params["tok_emb"].shape[1]
    X = packed_params["tok_emb"][tokens] + packed_params["seg_emb"][segments]
    X = X + packed_params["pos_emb"][:, :T, :]

    Bb = _pick_batch_block(B, T)
    x2d = X.reshape(B * T, H).astype(jnp.bfloat16)     # bf16 residual stream
    vl3 = valid_lens.astype(jnp.int32).reshape(B, 1, 1)
    for blk in packed_params["blocks"]:
        x2d = encoder_block_pallas(x2d, vl3, blk, num_heads, T, Bb)
    return x2d.astype(jnp.float32).reshape(B, T, H)


# ---------------------------------------------------------------------------
# Pure-JAX f32 reference (mirrors the PyTorch module, eval / dropout=0).
# ---------------------------------------------------------------------------
def ref_block(x, valid_lens, p, num_heads):
    B, T, H = x.shape
    hd = H // num_heads

    def lin(z, w, b):
        return z @ w + b[0]

    q, k, v = lin(x, p["wq"], p["bq"]), lin(x, p["wk"], p["bk"]), lin(x, p["wv"], p["bv"])

    def split(z):
        return z.reshape(B, T, num_heads, hd).transpose(0, 2, 1, 3)

    qh, kh, vh = split(q), split(k), split(v)
    s = jnp.einsum("bhtd,bhsd->bhts", qh, kh) / np.sqrt(hd)
    mask = jnp.arange(T)[None, None, None, :] < valid_lens[:, None, None, None]
    s = jnp.where(mask, s, -1000000.0)
    w = jax.nn.softmax(s, axis=-1)
    o = jnp.einsum("bhts,bhsd->bhtd", w, vh).transpose(0, 2, 1, 3).reshape(B, T, H)
    o = lin(o, p["wo"], p["bo"])
    y = _layernorm(x + o, p["g1"], p["be1"])
    f = lin(jnp.maximum(lin(y, p["w1"], p["b1"]), 0.0), p["w2"], p["b2"])
    return _layernorm(y + f, p["g2"], p["be2"])


def ref_forward(tokens, segments, valid_lens, params, num_heads):
    T = tokens.shape[1]
    X = params["tok_emb"][tokens] + params["seg_emb"][segments]
    X = X + params["pos_emb"][:, :T, :]
    for blk in params["blocks"]:
        X = ref_block(X, valid_lens, blk, num_heads)
    return X


# ---------------------------------------------------------------------------
# Deterministic synthetic parameter init (f32, PyTorch-equivalent layout).
# ---------------------------------------------------------------------------
def init_params(key, vocab_size, num_hiddens, ffn_num_hiddens, num_layers, max_len):
    H, F = num_hiddens, ffn_num_hiddens
    keys = jax.random.split(key, 3 + num_layers)
    params = {
        "tok_emb": 0.02 * jax.random.normal(keys[0], (vocab_size, H), jnp.float32),
        "seg_emb": 0.02 * jax.random.normal(keys[1], (2, H), jnp.float32),
        "pos_emb": 0.02 * jax.random.normal(keys[2], (1, max_len, H), jnp.float32),
        "blocks": [],
    }
    for i in range(num_layers):
        bk = jax.random.split(keys[3 + i], 10)
        blk = {
            "wq": 0.05 * jax.random.normal(bk[0], (H, H), jnp.float32),
            "bq": 0.05 * jax.random.normal(bk[1], (1, H), jnp.float32),
            "wk": 0.05 * jax.random.normal(bk[2], (H, H), jnp.float32),
            "bk": 0.05 * jax.random.normal(bk[3], (1, H), jnp.float32),
            "wv": 0.05 * jax.random.normal(bk[4], (H, H), jnp.float32),
            "bv": 0.05 * jax.random.normal(bk[5], (1, H), jnp.float32),
            "wo": 0.05 * jax.random.normal(bk[6], (H, H), jnp.float32),
            "bo": 0.05 * jax.random.normal(bk[7], (1, H), jnp.float32),
            "g1": jnp.ones((1, H), jnp.float32),
            "be1": jnp.zeros((1, H), jnp.float32),
            "w1": 0.05 * jax.random.normal(bk[8], (H, F), jnp.float32),
            "b1": jnp.zeros((1, F), jnp.float32),
            "w2": 0.05 * jax.random.normal(bk[9], (F, H), jnp.float32),
            "b2": jnp.zeros((1, H), jnp.float32),
            "g2": jnp.ones((1, H), jnp.float32),
            "be2": jnp.zeros((1, H), jnp.float32),
        }
        params["blocks"].append(blk)
    return params


if __name__ == "__main__":
    # Small BERTEncoder config.
    VOCAB = 100
    H = 32            # num_hiddens (== key/query/value size)
    FFN = 64          # ffn_num_hiddens
    HEADS = 4
    LAYERS = 2
    MAX_LEN = 16
    B, T = 2, 8

    key = jax.random.PRNGKey(0)
    kp, kt, ks = jax.random.split(key, 3)
    params = init_params(kp, VOCAB, H, FFN, LAYERS, MAX_LEN)
    packed = pack_params(params, HEADS)     # one-time param prep (per-head layout, bf16)

    tokens = jax.random.randint(kt, (B, T), 0, VOCAB, dtype=jnp.int32)
    segments = jax.random.randint(ks, (B, T), 0, 2, dtype=jnp.int32)
    valid_lens = jnp.array([5, 8], dtype=jnp.int32)

    out = bert_encoder_forward(tokens, segments, valid_lens, packed, HEADS)
    out = jax.block_until_ready(out)

    ref = jax.block_until_ready(ref_forward(tokens, segments, valid_lens, params, HEADS))
    assert out.shape == (B, T, H)
    # bf16 matmul operands + bf16 residual stream (f32 accumulation / f32
    # layernorm) + approx reciprocal => looser tolerance than pure f32.
    np.testing.assert_allclose(np.asarray(out), np.asarray(ref), atol=5e-2, rtol=5e-2)

    print("KERNEL_OK")
</pallas_src>

<mosaic_0001>
module attributes {stable_mosaic.version = 11 : i64} {
  func.func @encoder_block_kernel(%arg0: i32, %arg1: i32, %arg2: memref<1x1x1xi32, #tpu.memory_space<vmem>>, %arg3: memref<8x32xbf16, #tpu.memory_space<vmem>>, %arg4: memref<1x32x24xbf16, #tpu.memory_space<vmem>>, %arg5: memref<1x1x24xf32, #tpu.memory_space<vmem>>, %arg6: memref<1x8x32xbf16, #tpu.memory_space<vmem>>, %arg7: memref<1x32xf32, #tpu.memory_space<vmem>>, %arg8: memref<1x32xf32, #tpu.memory_space<vmem>>, %arg9: memref<1x32xf32, #tpu.memory_space<vmem>>, %arg10: memref<32x64xbf16, #tpu.memory_space<vmem>>, %arg11: memref<1x64xf32, #tpu.memory_space<vmem>>, %arg12: memref<64x32xbf16, #tpu.memory_space<vmem>>, %arg13: memref<1x32xf32, #tpu.memory_space<vmem>>, %arg14: memref<1x32xf32, #tpu.memory_space<vmem>>, %arg15: memref<1x32xf32, #tpu.memory_space<vmem>>, %arg16: memref<8x32xbf16, #tpu.memory_space<vmem>>, %arg17: memref<8x32xf32, #tpu.memory_space<vmem>>) attributes {dimension_semantics = [#tpu.dimension_semantics<parallel>, #tpu.dimension_semantics<arbitrary>], iteration_bounds = array<i64: 2, 4>, scalar_prefetch = 0 : i64, scratch_operands = 1 : i64, tpu.core_type = #tpu.core_type<tc>, window_params = [{transform_indices = @transform_0, window_bounds = array<i64: 1, 1, 1>}, {transform_indices = @transform_1, window_bounds = array<i64: 8, 32>}, {transform_indices = @transform_2, window_bounds = array<i64: 1, 32, 24>}, {transform_indices = @transform_3, window_bounds = array<i64: 1, 1, 24>}, {transform_indices = @transform_4, window_bounds = array<i64: 1, 8, 32>}, {pipeline_mode = #tpu.pipeline_mode<synchronous>, transform_indices = @transform_5, window_bounds = array<i64: 1, 32>}, {pipeline_mode = #tpu.pipeline_mode<synchronous>, transform_indices = @transform_6, window_bounds = array<i64: 1, 32>}, {pipeline_mode = #tpu.pipeline_mode<synchronous>, transform_indices = @transform_7, window_bounds = array<i64: 1, 32>}, {pipeline_mode = #tpu.pipeline_mode<synchronous>, transform_indices = @transform_8, window_bounds = array<i64: 32, 64>}, {pipeline_mode = #tpu.pipeline_mode<synchronous>, transform_indices = @transform_9, window_bounds = array<i64: 1, 64>}, {pipeline_mode = #tpu.pipeline_mode<synchronous>, transform_indices = @transform_10, window_bounds = array<i64: 64, 32>}, {pipeline_mode = #tpu.pipeline_mode<synchronous>, transform_indices = @transform_11, window_bounds = array<i64: 1, 32>}, {pipeline_mode = #tpu.pipeline_mode<synchronous>, transform_indices = @transform_12, window_bounds = array<i64: 1, 32>}, {pipeline_mode = #tpu.pipeline_mode<synchronous>, transform_indices = @transform_13, window_bounds = array<i64: 1, 32>}, {transform_indices = @transform_14, window_bounds = array<i64: 8, 32>}]} {
    %c0 = arith.constant 0 : index
    %c0_0 = arith.constant 0 : index
    %0 = vector.load %arg3[%c0, %c0_0] : memref<8x32xbf16, #tpu.memory_space<vmem>>, vector<8x32xbf16>
    %c0_i32 = arith.constant 0 : i32
    %1 = arith.cmpi eq, %arg1, %c0_i32 : i32
    %2 = arith.extui %1 : i1 to i32
    %c0_i32_1 = arith.constant 0 : i32
    %3 = arith.cmpi ne, %2, %c0_i32_1 : i32
    scf.if %3 {
      %50 = arith.extf %0 : vector<8x32xbf16> to vector<8x32xf32>
      %c0_25 = arith.constant 0 : index
      %c0_26 = arith.constant 0 : index
      %51 = vector.load %arg7[%c0_25, %c0_26] : memref<1x32xf32, #tpu.memory_space<vmem>>, vector<1x32xf32>
      %52 = vector.broadcast %51 : vector<1x32xf32> to vector<8x32xf32>
      %53 = arith.addf %50, %52 : vector<8x32xf32>
      %c0_27 = arith.constant 0 : index
      %c0_28 = arith.constant 0 : index
      %54 = vector.load %arg17[%c0_27, %c0_28] : memref<8x32xf32, #tpu.memory_space<vmem>>, vector<8x32xf32>
      tpu.vector_store %arg17[%c0_27, %c0_28], %53 {strides = array<i32>} : memref<8x32xf32, #tpu.memory_space<vmem>>, vector<8x32xf32>,
    } else {
    }
    %c0_2 = arith.constant 0 : index
    %c0_3 = arith.constant 0 : index
    %c0_4 = arith.constant 0 : index
    %4 = vector.load %arg4[%c0_2, %c0_3, %c0_4] : memref<1x32x24xbf16, #tpu.memory_space<vmem>>, vector<1x32x24xbf16>
    %5 = vector.shape_cast %4 : vector<1x32x24xbf16> to vector<32x24xbf16>
    %cst = arith.constant dense<0.000000e+00> : vector<8x24xf32>
    %6 = tpu.matmul %0, %5, %cst {dimension_numbers = #tpu.dot_dimension_numbers<[1], [0], [0], [1], [0, 0, 1, 1], [], []>} : vector<8x32xbf16>, vector<32x24xbf16>, vector<8x24xf32> -> vector<8x24xf32>
    %c0_5 = arith.constant 0 : index
    %c0_6 = arith.constant 0 : index
    %c0_7 = arith.constant 0 : index
    %7 = vector.load %arg5[%c0_5, %c0_6, %c0_7] : memref<1x1x24xf32, #tpu.memory_space<vmem>>, vector<1x1x24xf32>
    %8 = vector.shape_cast %7 : vector<1x1x24xf32> to vector<1x24xf32>
    %9 = vector.broadcast %8 : vector<1x24xf32> to vector<8x24xf32>
    %10 = arith.addf %6, %9 : vector<8x24xf32>
    %11 = vector.shape_cast %10 : vector<8x24xf32> to vector<1x8x24xf32>
    %12 = vector.extract_strided_slice %11 {offsets = [0, 0, 0], sizes = [1, 8, 8], strides = [1, 1, 1]} : vector<1x8x24xf32> to vector<1x8x8xf32>
    %13 = arith.truncf %12 : vector<1x8x8xf32> to vector<1x8x8xbf16>
    %14 = vector.extract_strided_slice %11 {offsets = [0, 0, 8], sizes = [1, 8, 8], strides = [1, 1, 1]} : vector<1x8x24xf32> to vector<1x8x8xf32>
    %15 = arith.truncf %14 : vector<1x8x8xf32> to vector<1x8x8xbf16>
    %16 = vector.extract_strided_slice %11 {offsets = [0, 0, 16], sizes = [1, 8, 8], strides = [1, 1, 1]} : vector<1x8x24xf32> to vector<1x8x8xf32>
    %17 = arith.truncf %16 : vector<1x8x8xf32> to vector<1x8x8xbf16>
    "tpu.trace_start"() <{level = 10 : i32, message = "bqd,bkd->bqk"}> : () -> ()
    %cst_8 = arith.constant dense<0.000000e+00> : vector<1x8x8xf32>
    %18 = tpu.matmul %13, %15, %cst_8 {dimension_numbers = #tpu.dot_dimension_numbers<[2], [2], [1], [1], [0, 0, 0, 1, 1, 1], [0], [0]>} : vector<1x8x8xbf16>, vector<1x8x8xbf16>, vector<1x8x8xf32> -> vector<1x8x8xf32>
    "tpu.trace_stop"() : () -> ()
    %19 = tpu.iota {dimensions = array<i32: 2>} : vector<1x1x8xi32>
    %c0_9 = arith.constant 0 : index
    %c0_10 = arith.constant 0 : index
    %c0_11 = arith.constant 0 : index
    %20 = vector.load %arg2[%c0_9, %c0_10, %c0_11] : memref<1x1x1xi32, #tpu.memory_space<vmem>>, vector<1x1x1xi32>
    %21 = vector.broadcast %20 : vector<1x1x1xi32> to vector<1x1x8xi32>
    %22 = arith.cmpi slt, %19, %21 : vector<1x1x8xi32>
    %cst_12 = arith.constant -1.000000e+06 : f32
    %23 = vector.shape_cast %22 : vector<1x1x8xi1> to vector<1x1x8xi1>
    %24 = vector.broadcast %23 : vector<1x1x8xi1> to vector<1x8x8xi1>
    %25 = vector.broadcast %cst_12 : f32 to vector<1x8x8xf32>
    %26 = arith.select %24, %18, %25 : vector<1x8x8xi1>, vector<1x8x8xf32>
    %cst_13 = arith.constant dense<0xFF800000> : vector<1x8xf32>
    %27 = vector.multi_reduction <maximumf>, %26, %cst_13 [2] : vector<1x8x8xf32> to vector<1x8xf32>
    %28 = vector.shape_cast %27 : vector<1x8xf32> to vector<1x8x1xf32>
    %29 = vector.broadcast %28 : vector<1x8x1xf32> to vector<1x8x8xf32>
    %30 = arith.subf %26, %29 : vector<1x8x8xf32>
    %31 = math.exp %30 : vector<1x8x8xf32>
    %cst_14 = arith.constant dense<0.000000e+00> : vector<1x8xf32>
    %32 = vector.multi_reduction <add>, %31, %cst_14 [2] : vector<1x8x8xf32> to vector<1x8xf32>
    %33 = vector.shape_cast %32 : vector<1x8xf32> to vector<1x8x1xf32>
    %34 = tpu.reciprocal %33 {approx = true} : vector<1x8x1xf32> -> vector<1x8x1xf32>
    %35 = vector.broadcast %34 : vector<1x8x1xf32> to vector<1x8x8xf32>
    %36 = arith.mulf %31, %35 : vector<1x8x8xf32>
    %37 = arith.truncf %36 : vector<1x8x8xf32> to vector<1x8x8xbf16>
    "tpu.trace_start"() <{level = 10 : i32, message = "bqk,bkd->bqd"}> : () -> ()
    %cst_15 = arith.constant dense<0.000000e+00> : vector<1x8x8xf32>
    %38 = tpu.matmul %37, %17, %cst_15 {dimension_numbers = #tpu.dot_dimension_numbers<[2], [1], [1], [2], [0, 0, 0, 1, 1, 2], [0], [0]>} : vector<1x8x8xbf16>, vector<1x8x8xbf16>, vector<1x8x8xf32> -> vector<1x8x8xf32>
    "tpu.trace_stop"() : () -> ()
    %c0_16 = arith.constant 0 : index
    %c0_17 = arith.constant 0 : index
    %39 = vector.load %arg17[%c0_16, %c0_17] : memref<8x32xf32, #tpu.memory_space<vmem>>, vector<8x32xf32>
    %40 = vector.shape_cast %38 : vector<1x8x8xf32> to vector<8x8xf32>
    %41 = arith.truncf %40 : vector<8x8xf32> to vector<8x8xbf16>
    %c0_18 = arith.constant 0 : index
    %c0_19 = arith.constant 0 : index
    %c0_20 = arith.constant 0 : index
    %42 = vector.load %arg6[%c0_18, %c0_19, %c0_20] : memref<1x8x32xbf16, #tpu.memory_space<vmem>>, vector<1x8x32xbf16>
    %43 = vector.shape_cast %42 : vector<1x8x32xbf16> to vector<8x32xbf16>
    %cst_21 = arith.constant dense<0.000000e+00> : vector<8x32xf32>
    %44 = tpu.matmul %41, %43, %cst_21 {dimension_numbers = #tpu.dot_dimension_numbers<[1], [0], [0], [1], [0, 0, 1, 1], [], []>} : vector<8x8xbf16>, vector<8x32xbf16>, vector<8x32xf32> -> vector<8x32xf32>
    %45 = arith.addf %39, %44 : vector<8x32xf32>
    %c0_22 = arith.constant 0 : index
    %c0_23 = arith.constant 0 : index
    %46 = vector.load %arg17[%c0_22, %c0_23] : memref<8x32xf32, #tpu.memory_space<vmem>>, vector<8x32xf32>
    tpu.vector_store %arg17[%c0_22, %c0_23], %45 {strides = array<i32>} : memref<8x32xf32, #tpu.memory_space<vmem>>, vector<8x32xf32>,
    %c3_i32 = arith.constant 3 : i32
    %47 = arith.cmpi eq, %arg1, %c3_i32 : i32
    %48 = arith.extui %47 : i1 to i32
    %c0_i32_24 = arith.constant 0 : i32
    %49 = arith.cmpi ne, %48, %c0_i32_24 : i32
    scf.if %49 {
      %c0_25 = arith.constant 0 : index
      %c0_26 = arith.constant 0 : index
      %50 = vector.load %arg17[%c0_25, %c0_26] : memref<8x32xf32, #tpu.memory_space<vmem>>, vector<8x32xf32>
      %c0_27 = arith.constant 0 : index
      %c0_28 = arith.constant 0 : index
      %51 = vector.load %arg8[%c0_27, %c0_28] : memref<1x32xf32, #tpu.memory_space<vmem>>, vector<1x32xf32>
      %c0_29 = arith.constant 0 : index
      %c0_30 = arith.constant 0 : index
      %52 = vector.load %arg9[%c0_29, %c0_30] : memref<1x32xf32, #tpu.memory_space<vmem>>, vector<1x32xf32>
      %cst_31 = arith.constant dense<0.000000e+00> : vector<8xf32>
      %53 = vector.multi_reduction <add>, %50, %cst_31 [1] : vector<8x32xf32> to vector<8xf32>
      %54 = vector.shape_cast %53 : vector<8xf32> to vector<8x1xf32>
      %cst_32 = arith.constant 3.200000e+01 : f32
      %55 = vector.broadcast %cst_32 : f32 to vector<8x1xf32>
      %56 = arith.divf %54, %55 : vector<8x1xf32>
      %57 = vector.broadcast %56 : vector<8x1xf32> to vector<8x32xf32>
      %58 = arith.subf %50, %57 : vector<8x32xf32>
      %59 = arith.mulf %58, %58 : vector<8x32xf32>
      %cst_33 = arith.constant dense<0.000000e+00> : vector<8xf32>
      %60 = vector.multi_reduction <add>, %59, %cst_33 [1] : vector<8x32xf32> to vector<8xf32>
      %61 = vector.shape_cast %60 : vector<8xf32> to vector<8x1xf32>
      %cst_34 = arith.constant 3.200000e+01 : f32
      %62 = vector.broadcast %cst_34 : f32 to vector<8x1xf32>
      %63 = arith.divf %61, %62 : vector<8x1xf32>
      %64 = vector.broadcast %56 : vector<8x1xf32> to vector<8x32xf32>
      %65 = arith.subf %50, %64 : vector<8x32xf32>
      %cst_35 = arith.constant 9.99999974E-6 : f32
      %66 = vector.broadcast %cst_35 : f32 to vector<8x1xf32>
      %67 = arith.addf %63, %66 : vector<8x1xf32>
      %68 = math.rsqrt %67 : vector<8x1xf32>
      %69 = vector.broadcast %68 : vector<8x1xf32> to vector<8x32xf32>
      %70 = arith.mulf %65, %69 : vector<8x32xf32>
      %71 = vector.broadcast %51 : vector<1x32xf32> to vector<8x32xf32>
      %72 = arith.mulf %70, %71 : vector<8x32xf32>
      %73 = vector.broadcast %52 : vector<1x32xf32> to vector<8x32xf32>
      %74 = arith.addf %72, %73 : vector<8x32xf32>
      %75 = arith.truncf %74 : vector<8x32xf32> to vector<8x32xbf16>
      %c0_36 = arith.constant 0 : index
      %c0_37 = arith.constant 0 : index
      %76 = vector.load %arg10[%c0_36, %c0_37] : memref<32x64xbf16, #tpu.memory_space<vmem>>, vector<32x64xbf16>
      %cst_38 = arith.constant dense<0.000000e+00> : vector<8x64xf32>
      %77 = tpu.matmul %75, %76, %cst_38 {dimension_numbers = #tpu.dot_dimension_numbers<[1], [0], [0], [1], [0, 0, 1, 1], [], []>} : vector<8x32xbf16>, vector<32x64xbf16>, vector<8x64xf32> -> vector<8x64xf32>
      %c0_39 = arith.constant 0 : index
      %c0_40 = arith.constant 0 : index
      %78 = vector.load %arg11[%c0_39, %c0_40] : memref<1x64xf32, #tpu.memory_space<vmem>>, vector<1x64xf32>
      %79 = vector.broadcast %78 : vector<1x64xf32> to vector<8x64xf32>
      %80 = arith.addf %77, %79 : vector<8x64xf32>
      %cst_41 = arith.constant 0.000000e+00 : f32
      %81 = vector.broadcast %cst_41 : f32 to vector<8x64xf32>
      %82 = arith.maximumf %80, %81 : vector<8x64xf32>
      %83 = arith.truncf %82 : vector<8x64xf32> to vector<8x64xbf16>
      %c0_42 = arith.constant 0 : index
      %c0_43 = arith.constant 0 : index
      %84 = vector.load %arg12[%c0_42, %c0_43] : memref<64x32xbf16, #tpu.memory_space<vmem>>, vector<64x32xbf16>
      %cst_44 = arith.constant dense<0.000000e+00> : vector<8x32xf32>
      %85 = tpu.matmul %83, %84, %cst_44 {dimension_numbers = #tpu.dot_dimension_numbers<[1], [0], [0], [1], [0, 0, 1, 1], [], []>} : vector<8x64xbf16>, vector<64x32xbf16>, vector<8x32xf32> -> vector<8x32xf32>
      %c0_45 = arith.constant 0 : index
      %c0_46 = arith.constant 0 : index
      %86 = vector.load %arg13[%c0_45, %c0_46] : memref<1x32xf32, #tpu.memory_space<vmem>>, vector<1x32xf32>
      %87 = vector.broadcast %86 : vector<1x32xf32> to vector<8x32xf32>
      %88 = arith.addf %85, %87 : vector<8x32xf32>
      %89 = arith.addf %74, %88 : vector<8x32xf32>
      %c0_47 = arith.constant 0 : index
      %c0_48 = arith.constant 0 : index
      %90 = vector.load %arg14[%c0_47, %c0_48] : memref<1x32xf32, #tpu.memory_space<vmem>>, vector<1x32xf32>
      %c0_49 = arith.constant 0 : index
      %c0_50 = arith.constant 0 : index
      %91 = vector.load %arg15[%c0_49, %c0_50] : memref<1x32xf32, #tpu.memory_space<vmem>>, vector<1x32xf32>
      %cst_51 = arith.constant dense<0.000000e+00> : vector<8xf32>
      %92 = vector.multi_reduction <add>, %89, %cst_51 [1] : vector<8x32xf32> to vector<8xf32>
      %93 = vector.shape_cast %92 : vector<8xf32> to vector<8x1xf32>
      %cst_52 = arith.constant 3.200000e+01 : f32
      %94 = vector.broadcast %cst_52 : f32 to vector<8x1xf32>
      %95 = arith.divf %93, %94 : vector<8x1xf32>
      %96 = vector.broadcast %95 : vector<8x1xf32> to vector<8x32xf32>
      %97 = arith.subf %89, %96 : vector<8x32xf32>
      %98 = arith.mulf %97, %97 : vector<8x32xf32>
      %cst_53 = arith.constant dense<0.000000e+00> : vector<8xf32>
      %99 = vector.multi_reduction <add>, %98, %cst_53 [1] : vector<8x32xf32> to vector<8xf32>
      %100 = vector.shape_cast %99 : vector<8xf32> to vector<8x1xf32>
      %cst_54 = arith.constant 3.200000e+01 : f32
      %101 = vector.broadcast %cst_54 : f32 to vector<8x1xf32>
      %102 = arith.divf %100, %101 : vector<8x1xf32>
      %103 = vector.broadcast %95 : vector<8x1xf32> to vector<8x32xf32>
      %104 = arith.subf %89, %103 : vector<8x32xf32>
      %cst_55 = arith.constant 9.99999974E-6 : f32
      %105 = vector.broadcast %cst_55 : f32 to vector<8x1xf32>
      %106 = arith.addf %102, %105 : vector<8x1xf32>
      %107 = math.rsqrt %106 : vector<8x1xf32>
      %108 = vector.broadcast %107 : vector<8x1xf32> to vector<8x32xf32>
      %109 = arith.mulf %104, %108 : vector<8x32xf32>
      %110 = vector.broadcast %90 : vector<1x32xf32> to vector<8x32xf32>
      %111 = arith.mulf %109, %110 : vector<8x32xf32>
      %112 = vector.broadcast %91 : vector<1x32xf32> to vector<8x32xf32>
      %113 = arith.addf %111, %112 : vector<8x32xf32>
      %114 = arith.truncf %113 : vector<8x32xf32> to vector<8x32xbf16>
      %c0_56 = arith.constant 0 : index
      %c0_57 = arith.constant 0 : index
      %115 = vector.load %arg16[%c0_56, %c0_57] : memref<8x32xbf16, #tpu.memory_space<vmem>>, vector<8x32xbf16>
      tpu.vector_store %arg16[%c0_56, %c0_57], %114 {strides = array<i32>} : memref<8x32xbf16, #tpu.memory_space<vmem>>, vector<8x32xbf16>,
    } else {
    }
    return
  }
  func.func @transform_0(%arg0: i32, %arg1: i32) -> (i32, i32, i32) {
    %c0_i32 = arith.constant 0 : i32
    %c0_i32_0 = arith.constant 0 : i32
    %c0_i32_1 = arith.constant 0 : i32
    return %arg0, %c0_i32, %c0_i32_0 : i32, i32, i32
  }
  func.func @transform_1(%arg0: i32, %arg1: i32) -> (i32, i32) {
    %c0_i32 = arith.constant 0 : i32
    %c0_i32_0 = arith.constant 0 : i32
    return %arg0, %c0_i32 : i32, i32
  }
  func.func @transform_2(%arg0: i32, %arg1: i32) -> (i32, i32, i32) {
    %c0_i32 = arith.constant 0 : i32
    %c0_i32_0 = arith.constant 0 : i32
    %c0_i32_1 = arith.constant 0 : i32
    return %arg1, %c0_i32, %c0_i32_0 : i32, i32, i32
  }
  func.func @transform_3(%arg0: i32, %arg1: i32) -> (i32, i32, i32) {
    %c0_i32 = arith.constant 0 : i32
    %c0_i32_0 = arith.constant 0 : i32
    %c0_i32_1 = arith.constant 0 : i32
    return %arg1, %c0_i32, %c0_i32_0 : i32, i32, i32
  }
  func.func @transform_4(%arg0: i32, %arg1: i32) -> (i32, i32, i32) {
    %c0_i32 = arith.constant 0 : i32
    %c0_i32_0 = arith.constant 0 : i32
    %c0_i32_1 = arith.constant 0 : i32
    return %arg1, %c0_i32, %c0_i32_0 : i32, i32, i32
  }
  func.func @transform_5(%arg0: i32, %arg1: i32) -> (i32, i32) {
    %c0_i32 = arith.constant 0 : i32
    %c0_i32_0 = arith.constant 0 : i32
    %c0_i32_1 = arith.constant 0 : i32
    return %c0_i32, %c0_i32_0 : i32, i32
  }
  func.func @transform_6(%arg0: i32, %arg1: i32) -> (i32, i32) {
    %c0_i32 = arith.constant 0 : i32
    %c0_i32_0 = arith.constant 0 : i32
    %c0_i32_1 = arith.constant 0 : i32
    return %c0_i32, %c0_i32_0 : i32, i32
  }
  func.func @transform_7(%arg0: i32, %arg1: i32) -> (i32, i32) {
    %c0_i32 = arith.constant 0 : i32
    %c0_i32_0 = arith.constant 0 : i32
    %c0_i32_1 = arith.constant 0 : i32
    return %c0_i32, %c0_i32_0 : i32, i32
  }
  func.func @transform_8(%arg0: i32, %arg1: i32) -> (i32, i32) {
    %c0_i32 = arith.constant 0 : i32
    %c0_i32_0 = arith.constant 0 : i32
    %c0_i32_1 = arith.constant 0 : i32
    return %c0_i32, %c0_i32_0 : i32, i32
  }
  func.func @transform_9(%arg0: i32, %arg1: i32) -> (i32, i32) {
    %c0_i32 = arith.constant 0 : i32
    %c0_i32_0 = arith.constant 0 : i32
    %c0_i32_1 = arith.constant 0 : i32
    return %c0_i32, %c0_i32_0 : i32, i32
  }
  func.func @transform_10(%arg0: i32, %arg1: i32) -> (i32, i32) {
    %c0_i32 = arith.constant 0 : i32
    %c0_i32_0 = arith.constant 0 : i32
    %c0_i32_1 = arith.constant 0 : i32
    return %c0_i32, %c0_i32_0 : i32, i32
  }
  func.func @transform_11(%arg0: i32, %arg1: i32) -> (i32, i32) {
    %c0_i32 = arith.constant 0 : i32
    %c0_i32_0 = arith.constant 0 : i32
    %c0_i32_1 = arith.constant 0 : i32
    return %c0_i32, %c0_i32_0 : i32, i32
  }
  func.func @transform_12(%arg0: i32, %arg1: i32) -> (i32, i32) {
    %c0_i32 = arith.constant 0 : i32
    %c0_i32_0 = arith.constant 0 : i32
    %c0_i32_1 = arith.constant 0 : i32
    return %c0_i32, %c0_i32_0 : i32, i32
  }
  func.func @transform_13(%arg0: i32, %arg1: i32) -> (i32, i32) {
    %c0_i32 = arith.constant 0 : i32
    %c0_i32_0 = arith.constant 0 : i32
    %c0_i32_1 = arith.constant 0 : i32
    return %c0_i32, %c0_i32_0 : i32, i32
  }
  func.func @transform_14(%arg0: i32, %arg1: i32) -> (i32, i32) {
    %c0_i32 = arith.constant 0 : i32
    %c0_i32_0 = arith.constant 0 : i32
    return %arg0, %c0_i32 : i32, i32
  }
}

</mosaic_0001>

<bundles_post_ra>
// kernel: tpu_custom_call.1
= control target key start
LH: loop header
LB: loop body
LE: loop exit
PB: predicated region body
PF: predicated region fallthrough
CT: control target
= control target key end

     0   :  { %s1740_s0 = inlined_call_operand.vmem [shape: s32[2,1,1], index: 0, kind: input, shape index: {}]   ;;  %s1741_s1 = inlined_call_operand.vmem [shape: bf16[16,32], index: 1, kind: input, shape index: {}]   ;;  %s1742_s2 = inlined_call_operand.vmem [shape: bf16[4,32,24], index: 2, kind: input, shape index: {}]   ;;  %s1743_s3 = inlined_call_operand.vmem [shape: f32[4,1,24], index: 3, kind: input, shape index: {}]   ;;  %s1744_s4 = inlined_call_operand.vmem [shape: bf16[4,8,32], index: 4, kind: input, shape index: {}]   ;;  %s1745_s5 = inlined_call_operand.vmem [shape: f32[1,32], index: 5, kind: input, shape index: {}]   ;;  %s1746_s6 = inlined_call_operand.vmem [shape: f32[1,32], index: 6, kind: input, shape index: {}]   ;;  %s1747_s7 = inlined_call_operand.vmem [shape: f32[1,32], index: 7, kind: input, shape index: {}]   ;;  %s1748_s8 = inlined_call_operand.vmem [shape: bf16[32,64], index: 8, kind: input, shape index: {}]   ;;  %s1749_s9 = inlined_call_operand.vmem [shape: f32[1,64], index: 9, kind: input, shape index: {}]   ;;  %s1750_s10 = inlined_call_operand.vmem [shape: bf16[64,32], index: 10, kind: input, shape index: {}]   ;;  %s1751_s11 = inlined_call_operand.vmem [shape: f32[1,32], index: 11, kind: input, shape index: {}]   ;;  %s1752_s12 = inlined_call_operand.vmem [shape: f32[1,32], index: 12, kind: input, shape index: {}]   ;;  %s1753_s13 = inlined_call_operand.vmem [shape: f32[1,32], index: 13, kind: input, shape index: {}]   ;;  %s1754_s14 = inlined_call_operand.hbm [shape: bf16[16,32], index: 14, kind: output, shape index: {}]  }
   0x1   :  { %1769 = sst [smem:[#allocation18_spill]] %s1751_s11 }
   0x2   :  { %1770 = sst [smem:[#allocation19_spill]] %s1752_s12 }
   0x3   :  { %1771 = sst [smem:[#allocation20_spill]] %s1753_s13 }
   0x4   :  { %1772 = sst [smem:[#allocation21_spill]] %s1754_s14 }
   0x5   :  { %19 = vsyncpa [#allocation4], 0 }
   0x6   :  { %21 = vsyncpa [#allocation4 + $0x1], 0  ;;  %s1521_s29 = smov 0   ;;  %s1523_s30 = smov 0  }
   0x7   :  { %s1525_s15 = smov 0   ;;  %s1527_s16 = smov 0  }
   0x8   :  { %s1529_s17 = smov 0   ;;  %s1531_s18 = smov 0  }
   0x9   :  { %s1533_s19 = smov 0   ;;  %s1535_s20 = smov 0  }
   0xa LB: > { %1773 = sst [smem:[#allocation6_spill]] %s1408_s29  ;;  %s1147_s21 = sadd.s32 4294967295, %s1436_s20   ;;  %s1436_s20 = sphi %s1535_s20, %s27_s20   ;;  %s1432_s19 = sphi %s1533_s19, %s1806_s19   ;;  %s1428_s18 = sphi %s1531_s18, %s1805_s18   ;;  %s1424_s17 = sphi %s1529_s17, %s1804_s17   ;;  %s1420_s16 = sphi %s1527_s16, %s1803_s16   ;;  %s1416_s15 = sphi %s1525_s15, %s1802_s15   ;;  %s1412_s30 = sphi %s1523_s30, %s1801_s30   ;;  %s1408_s29 = sphi %s1521_s29, %s1800_s29  }
   0xb   : > { %1774 = sst [smem:[#allocation7_spill]] %s1412_s30  ;;  %s1148_s22 = sadd.s32 4294967294, %s1436_s20  }
   0xc   : > { %1775 = sst [smem:[#allocation8_spill]] %s1416_s15  ;;  %s36_s23 = sadd.s32 1, %s1428_s18 }
   0xd   : > { %1776 = sst [smem:[#allocation9_spill]] %s1424_s17  ;;  %p37_p0 = scmp.ge.s32.totalorder %s36_s23, 4 }
   0xe   : > { %1777 = sst [smem:[#allocation10_spill]] %s1428_s18  ;;  %s39_s24 = sadd.s32 1, %s1432_s19 }
   0xf   : > { %1778 = sst [smem:[#allocation11_spill]] %s1432_s19  ;;  %p375_p1 = scmp.ne.s32.totalorder %s1416_s15, %s1412_s30 }
  0x10   : > { %1779 = sst [smem:[#allocation12_spill]] %s1436_s20  ;;  %p376_p2 = scmp.eq.s32.totalorder %s1147_s21, 7 }
  0x11   : > { %s1808_s23 = smov (%p37_p0, %s36_s23), 0  ;;  %s1810_s24 = smov (!%p37_p0, %s39_s24), %s1432_s19 }
  0x12   : > { %1780 = sst [smem:[#allocation13_spill]] %s1808_s23  ;;  %p1570_p3 = por %p376_p2, %p375_p1 }
  0x13   : > { %p381_p4 = scmp.ne.s32.totalorder %s1412_s30, %s1408_s29  ;;  %p41_p5 = scmp.ge.s32.totalorder %s1810_s24, 2 }
  0x14   : > { %s1781_s25 = scalar_select %p1570_p3, 1, 0 }
  0x15   : > { %p382_p6 = scmp.eq.s32.totalorder %s1148_s22, 7  ;;  %p1151_p7 = scmp.ge.s32.totalorder %s1436_s20, 1 }
  0x16   : > { %1782 = sst [smem:[#allocation14_spill]] %s1781_s25  ;;  %p461_p8 = scmp.lt.s32.totalorder %s1436_s20, 9 }
  0x17   : > { %s1812_s24 = smov (%p41_p5, %s1810_s24), 0  ;;  %p1580_p9 = por %p382_p6, %p381_p4 }
  0x18   : > { %1783 = sst [smem:[#allocation15_spill]] %s1812_s24  ;;  %p462_p10 = pnand %p1151_p7, %p461_p8 }
  0x19   : > { %s1784_s26 = scalar_select %p1580_p9, 1, 0 }
  0x1a   : > { %s362_s27 = ssub.s32 %s1432_s19, %s1812_s24  ;;  %s365_s28 = sadd.s32 1, %s1416_s15 }
  0x1b   : > { %1785 = sst [smem:[#allocation16_spill]] %s1784_s26  ;;  %p363_p11 = scmp.eq.s32.totalorder %s362_s27, 0 }
  0x1c   : > { %465 = sbr.rel (%p462_p10) target bundleno = 2322 (0x912), region = 76  ;;  %s1760_s22 = sand.u32 (!%p462_p10), 1, %s1412_s30  }
  0x1d   : > { %s1588_s21 = scalar_select %p363_p11, %s1416_s15, %s365_s28  }
  0x1e   : > { %p521_p12 = scmp.lt.s32.totalorder (!%p462_p10), %s1424_s17, 1  ;;  %s1594_s23 = sshll.u32 (!%p462_p10), %s1760_s22, 2 }
  0x1f   : > { %1786 = sst [smem:[#allocation17_spill]] %s1588_s21  ;;  %p528_p13 = scmp.lt.s32.totalorder (!%p462_p10), %s1420_s16, 3 }
  0x20   : > { %s520_s11 = scalar_lea.vmem (!%p462_p10), [#allocation3], %s1594_s23  ;;  %p1157_p0 = scmp.ne.s32.totalorder (!%p462_p10), %s1420_s16, 0 }
  0x21   : > { %s1598_s18 = scalar_select %p521_p12, %s1424_s17, 1 }
  0x22   : > { %s1601_s27 = scalar_select %p528_p13, %s1420_s16, 3 }
  0x23   : > { %s1153_s21 = sshll.u32 %s1598_s18, 2  ;;  %545 = sbr.rel (%p1157_p0) target bundleno = 45 (0x2d), region = 80 }
  0x24   : > { %s527_s22 = scalar_lea.vmem %s1741_s1, %s1153_s21  ;;  %s1185_s29 = sshll.u32 %s1601_s27, 4 }
  0x25   : > { %s532_s25 = scalar_lea.vmem %s1742_s2, %s1185_s29  ;;  %s535_s13 = scalar_lea.vmem %s1743_s3, %s1601_s27  ;;  %v541_v0 = vld [vmem:[%s527_s22] sm:$0xf] }
  0x26   : > { %s1156_s24 = sshll.u32 %s1601_s27, 2 }
  0x27   : > { %s1623_s19 = scalar_lea.vmem %s1744_s4, %s1156_s24 }
  0x28   : > { %v546_v1 = vunpack.c.l.bf16 %v541_v0  ;;  %v1158_v2 = vld [vmem:[%s1745_s5] ss:$0 sm:$0xff]  ;;  %vm555_vm0 = vcmask 261120  }
  0x2a   : > { %v554_v3 = vadd.f32 %v1158_v2, %v546_v1 }
  0x2c   : > { %556 = vst.msk [vmem:[#allocation2] sm:$0xff] %vm555_vm0, %v554_v3 }
  0x2d PF: > { %v1328_v4 = vld [vmem:[%s532_s25 + $0x8] sm:$0xff]   ;;  %v1438_v5 = vmov 0.0   ;;  %v1329_v6 = vld [vmem:[%s532_s25] sm:$0xff]   ;;  %vm1439_vm1 = vmmov 0   ;;  %vm580_vm2 = vcmask 261120   ;;  %v1440_v10 = vmov 0   ;;  %s1787_s30 = scalar_lea.vmem %s1740_s0, %s1598_s18 }
  0x2e   : > { %1203 = vmatprep.subr.bf16.mxu0 %v1438_v5  ;;  %1211 = vmatprep.subr.bf16.mxu1 %v1438_v5  ;;  %v1159_v7 = vld [vmem:[%s535_s13] ss:$0 sm:$0xff]  ;;  %s1441_s12 = smov 120   ;;  %vm628_vm3 = vcmask 64512   ;;  %v675_v18 = vlaneseq  ;;  %vm706_vm5 = vcmask 1043456   ;;  %s1442_s13 = smov 112  }
  0x2f   : > { %1204 = vmatpush3.bf16.msra.mxu0 %v1328_v4  ;;  %1207 = vmatprep.mubr.msk.bf16.mxu0 %vm1439_vm1, %v1438_v5  ;;  %v677_v15 = vld [vmem:[%s1787_s30] sm:$0x1]  ;;  %p1166_p1 = scmp.ne.s32.totalorder %s1420_s16, 3 }
  0x30   : > { %1205 = vmatprep.subr.bf16.mxu0 %v1438_v5  ;;  %1213 = vmatprep.mubr.msk.bf16.mxu1 %vm1439_vm1, %v1438_v5  ;;  %v682_v19 = vshrl.u32 %v675_v18, 7  ;;  %v676_v23 = vand.u32 127, %v675_v18  ;;  %v752_v35 = vld [vmem:[%s1623_s19] sm:$0xf]  ;;  %s1788_s16 = sld [smem:[#allocation18_spill]] (!%p1166_p1) }
  0x31   : > { %1327 = vset.pattern.permute.xlu0 %v1440_v10  ;;  %v757_v36 = vsel %vm706_vm5, %v752_v35, 0  ;;  %s1789_s25 = sld [smem:[#allocation19_spill]] (!%p1166_p1) }
  0x32   : > { %v683_v20 = vsub.s32 0, %v682_v19  ;;  %s1790_s27 = sld [smem:[#allocation20_spill]] (!%p1166_p1) }
  0x33   : > { %1206 = vmatpush3.bf16.msra.mxu0 %v1329_v6  ;;  %v750_v48 = vld [vmem:[#allocation2] sm:$0xff] }
  0x34   : > { %1217 = vmatprep.subr.bf16.mxu0 %v1438_v5 }
  0x36   : > { %1208 = vmatmul.mubr.msk.bf16.vlgmr.msra.gmra.mxu0 %vm580_vm2, %v541_v0 }
  0x37   : > { %1219 = vmatprep.mubr.msk.bf16.mxu0 %vm1439_vm1, %v1438_v5 }
  0xf6   : > { %v618_v8 = vpop.f32.mrf.mxu0 }
  0xf7   : > { %v619_v9 = vadd.f32 %v1159_v7, %v618_v8 }
  0xf8   : > { %v1209_v11 = vpop.f32.mrf.mxu0 }
  0xf9   : > { %v624_v12 = vpack.c.bf16 %v619_v9, %v619_v9 }
  0xfa   : > { %v621_v13 = vpop.f32.mrf.mxu0 }
  0xfb   : > { %626 = vrot.lane.b32.xlu0 %v624_v12, %s1441_s12 }
  0xfc   : > { %v1210_v14 = vpop.f32.mrf.mxu0 }
  0xff   : > { %679 = vperm.xlu0 %1327, %v677_v15  }
 0x16d   : > { %v627_v16 = vpop.permute.xlu0 %626 }
 0x16e   : > { %v633_v17 = vsel %vm628_vm3, %v627_v16, 0 }
 0x16f   : > { %1212 = vmatpush3.bf16.xpose.msra.mxu1 %v633_v17 }
 0x170   : > { %1223 = vmatprep.subr.bf16.mxu1 %v1438_v5 }
 0x176   : > { %1214 = vmatmul.mubr.msk.bf16.vlgmr.msra.gmra.mxu1 %vm628_vm3, %v624_v12 }
 0x177   : > { %1225 = vmatprep.mubr.msk.bf16.mxu1 %vm1439_vm1, %v1438_v5  ;;  %1224 = vmatpush3.bf16.msra.mxu1 %v757_v36 }
 0x17a   : > { %v680_v21 = vpop.permute.xlu0 %679 }
 0x17b   : > { %v684_v22 = vrot.slane %v680_v21, %v683_v20 }
 0x17d   : > { %vm685_vm4 = vcmp.lt.s32.totalorder %v676_v23, %v684_v22 }
 0x236   : > { %v669_v24 = vpop.f32.mrf.mxu1 }
 0x237   : > { %v688_v25 = vsel %vm685_vm4, %v669_v24, -1000000.0 }
 0x238   : > { %v1215_v26 = vpop.f32.mrf.mxu1  ;;  %v689_v27 = vsel %vm628_vm3, %v688_v25, -inf }
 0x239   : > { %690 = vmax.xlane.f32.xlu1 %v689_v27 }
 0x23a   : > { %v672_v28 = vpop.f32.mrf.mxu1 }
 0x23c   : > { %v1216_v29 = vpop.f32.mrf.mxu1 }
 0x2c2   : > { %v691_v30 = vpop.xlane.xlu1 %690 }
 0x2c3   : > { %v692_v31 = vsub.f32 %v688_v25, %v691_v30 }
 0x2c5   : > { %v693_v32 = vmul.f32 1.442695, %v692_v31 }
 0x2c7   : > { %1330 = vpow2.f32 %v693_v32 }
 0x2d4   : > { %v1331_v33 = vpop.eup %1330 }
 0x2d5   : > { %v695_v34 = vsel %vm628_vm3, %v1331_v33, 0.0 }
 0x2d6   : > { %696 = vadd.xlane.f32.xlu1 %v695_v34 }
 0x2e7   : > { %701 = vrot.lane.b32.xlu1 %v624_v12, %s1442_s13 }
 0x35f   : > { %v697_v37 = vpop.xlane.xlu1 %696 }
 0x360   : > { %1332 = vrcp.f32 %v697_v37 }
 0x363   : > { %v702_v38 = vpop.permute.xlu1 %701 }
 0x364   : > { %v708_v39 = vsel %vm706_vm5, %v702_v38, 0 }
 0x365   : > { %1218 = vmatpush3.bf16.msra.mxu0 %v708_v39 }
 0x36d   : > { %v1333_v40 = vpop.eup %1332 }
 0x36e   : > { %v699_v41 = vmul.f32 %v1333_v40, %v1331_v33 }
 0x370   : > { %v700_v42 = vpack.c.bf16 %v699_v41, %v699_v41 }
 0x372   : > { %1220 = vmatmul.mubr.msk.bf16.vlgmr.msra.gmra.mxu0 %vm628_vm3, %v700_v42 }
 0x432   : > { %v744_v43 = vpop.f32.mrf.mxu0 }
 0x433   : > { %v751_v44 = vpack.c.bf16 %v744_v43, %v744_v43 }
 0x434   : > { %v1221_v45 = vpop.f32.mrf.mxu0 }
 0x435   : > { %1226 = vmatmul.mubr.msk.bf16.vlgmr.msra.gmra.mxu1 %vm628_vm3, %v751_v44 }
 0x436   : > { %v747_v46 = vpop.f32.mrf.mxu0 }
 0x438   : > { %v1222_v47 = vpop.f32.mrf.mxu0 }
 0x4f5   : > { %v793_v49 = vpop.f32.mrf.mxu1 }
 0x4f6   : > { %v799_v50 = vadd.f32 %v793_v49, %v750_v48 }
 0x4f7   : > { %v1227_v51 = vpop.f32.mrf.mxu1  ;;  %804 = sbr.rel (%p1166_p1) target bundleno = 2297 (0x8f9), region = 84 }
 0x4f8   : > { %800 = vst.msk [vmem:[#allocation2] sm:$0xff] %vm580_vm2, %v799_v50 }
 0x4f9   : > { %v796_v52 = vpop.f32.mrf.mxu1 }
 0x4fb   : > { %v1228_v53 = vpop.f32.mrf.mxu1 }
 0x4fc   : > { %v1334_v61 = vld [vmem:[%s1748_s8 + $0x8] sm:$0xff]   ;;  %v1443_v62 = vmov 0.0   ;;  %vm1444_vm6 = vmmov 0   ;;  %v1335_v63 = vld [vmem:[%s1748_s8] sm:$0xff]   ;;  %v1336_v0 = vld [vmem:[%s1750_s10 + $0x18] sm:$0xff]   ;;  %vm944_vm7 = vcmask 523264  }
 0x4fd   : > { %1229 = vmatprep.subr.bf16.mxu0 %v1443_v62  ;;  %1233 = vmatprep.mubr.msk.bf16.mxu0 %vm1444_vm6, %v1443_v62  ;;  %v1337_v1 = vld [vmem:[%s1750_s10 + $0x10] sm:$0xff]   ;;  %v1167_v6 = vld [vmem:[%s1746_s6] ss:$0 sm:$0xff]  ;;  %v1338_v12 = vld [vmem:[%s1750_s10 + $0x8] sm:$0xff]   ;;  %vm1019_vm8 = vcmask 257024  }
 0x4fe   : > { %1230 = vmatpush3.bf16.msra.mxu0 %v1334_v61  ;;  %1237 = vmatprep.subr.bf16.mxu1 %v1443_v62  ;;  %v1168_v8 = vld [vmem:[%s1747_s7] ss:$0 sm:$0xff] }
 0x4ff   : > { %v805_v54 = vld [vmem:[#allocation2] sm:$0xff]  ;;  %1231 = vmatprep.subr.bf16.mxu0 %v1443_v62  ;;  %1245 = vmatprep.mubr.msk.bf16.mxu1 %vm1444_vm6, %v1443_v62  ;;  %v1339_v13 = vld [vmem:[%s1750_s10] sm:$0xff]  }
 0x500   : > { %v808_v55 = vsel %vm580_vm2, %v805_v54, 0.0  ;;  %1238 = vmatpush3.bf16.msra.mxu1 %v1336_v0  ;;  %v1169_v14 = vld [vmem:[%s1749_s9] ss:$0 sm:$0xff] }
 0x501   : > { %809 = vadd.xlane.f32.xlu0 %v808_v55  ;;  %1239 = vmatprep.subr.bf16.mxu1 %v1443_v62  ;;  %v1173_v22 = vld [vmem:[%s1788_s16] ss:$0 sm:$0xff] }
 0x502   : > { %1232 = vmatpush3.bf16.msra.mxu0 %v1335_v63  ;;  %v1179_v39 = vld [vmem:[%s1789_s25] ss:$0 sm:$0xff] }
 0x503   : > { %v1180_v41 = vld [vmem:[%s1790_s27] ss:$0 sm:$0xff] }
 0x504   : > { %1240 = vmatpush3.bf16.msra.mxu1 %v1337_v1 }
 0x505   : > { %1241 = vmatprep.subr.bf16.mxu1 %v1443_v62 }
 0x508   : > { %1242 = vmatpush3.bf16.msra.mxu1 %v1338_v12 }
 0x509   : > { %1243 = vmatprep.subr.bf16.mxu1 %v1443_v62 }
 0x50c   : > { %1244 = vmatpush3.bf16.msra.mxu1 %v1339_v13 }
 0x58a   : > { %v810_v56 = vpop.xlane.xlu0 %809 }
 0x58b   : > { %v812_v57 = vmul.f32 0.03125, %v810_v56 }
 0x58d   : > { %v813_v58 = vsub.f32 %v805_v54, %v812_v57 }
 0x58f   : > { %v814_v59 = vmul.f32 %v813_v58, %v813_v58 }
 0x591   : > { %v815_v60 = vsel %vm580_vm2, %v814_v59, 0.0 }
 0x592   : > { %816 = vadd.xlane.f32.xlu0 %v815_v60 }
 0x61b   : > { %v817_v2 = vpop.xlane.xlu0 %816 }
 0x61c   : > { %v818_v3 = vmul.f32 0.03125, %v817_v2 }
 0x61e   : > { %v819_v4 = vadd.f32 1e-05, %v818_v3 }
 0x620   : > { %1340 = vrsqrt.f32 %v819_v4 }
 0x62d   : > { %v1341_v5 = vpop.eup %1340 }
 0x62e   : > { %v821_v7 = vmul.f32 %v1341_v5, %v813_v58 }
 0x630   : > { %v828_v9 = vmul.f32 %v1167_v6, %v821_v7 }
 0x632   : > { %v835_v10 = vadd.f32 %v1168_v8, %v828_v9 }
 0x634   : > { %v836_v11 = vpack.c.bf16 %v835_v10, %v835_v10 }
 0x636   : > { %1234 = vmatmul.mubr.msk.bf16.vlgmr.msra.gmra.mxu0 %vm580_vm2, %v836_v11 }
 0x6f6   : > { %v897_v15 = vpop.f32.mrf.mxu0 }
 0x6f7   : > { %v898_v16 = vadd.f32 %v1169_v14, %v897_v15 }
 0x6f8   : > { %v1235_v17 = vpop.f32.mrf.mxu0 }
 0x6f9   : > { %v903_v18 = vmax.f32 %v898_v16, 0.0 }
 0x6fa   : > { %v900_v19 = vpop.f32.mrf.mxu0 }
 0x6fb   : > { %v904_v20 = vpack.c.bf16 %v903_v18, %v903_v18 }
 0x6fc   : > { %v1236_v21 = vpop.f32.mrf.mxu0 }
 0x6fd   : > { %1246 = vmatmul.mubr.msk.bf16.vlgmr.msra.gmra.mxu1 %vm944_vm7, %v904_v20 }
 0x7bd   : > { %v982_v23 = vpop.f32.mrf.mxu1 }
 0x7be   : > { %v983_v24 = vadd.f32 %v1173_v22, %v982_v23 }
 0x7bf   : > { %v1247_v25 = vpop.f32.mrf.mxu1 }
 0x7c0   : > { %v988_v26 = vadd.f32 %v983_v24, %v835_v10 }
 0x7c1   : > { %v985_v27 = vpop.f32.mrf.mxu1 }
 0x7c2   : > { %v991_v28 = vsel %vm580_vm2, %v988_v26, 0.0 }
 0x7c3   : > { %992 = vadd.xlane.f32.xlu1 %v991_v28  ;;  %v1248_v29 = vpop.f32.mrf.mxu1 }
 0x84c   : > { %v993_v30 = vpop.xlane.xlu1 %992 }
 0x84d   : > { %v994_v31 = vmul.f32 0.03125, %v993_v30 }
 0x84f   : > { %v995_v32 = vsub.f32 %v988_v26, %v994_v31 }
 0x851   : > { %v996_v33 = vmul.f32 %v995_v32, %v995_v32 }
 0x853   : > { %v997_v34 = vsel %vm580_vm2, %v996_v33, 0.0 }
 0x854   : > { %998 = vadd.xlane.f32.xlu1 %v997_v34 }
 0x8dd   : > { %v999_v35 = vpop.xlane.xlu1 %998 }
 0x8de   : > { %v1000_v36 = vmul.f32 0.03125, %v999_v35 }
 0x8e0   : > { %v1001_v37 = vadd.f32 1e-05, %v1000_v36 }
 0x8e2   : > { %1342 = vrsqrt.f32 %v1001_v37 }
 0x8ef   : > { %v1343_v38 = vpop.eup %1342 }
 0x8f0   : > { %v1003_v40 = vmul.f32 %v1343_v38, %v995_v32 }
 0x8f2   : > { %v1010_v42 = vmul.f32 %v1179_v39, %v1003_v40 }
 0x8f4   : > { %v1017_v43 = vadd.f32 %v1180_v41, %v1010_v42 }
 0x8f6   : > { %v1018_v44 = vpack.c.bf16 %v1017_v43, %v1017_v43 }
 0x8f8   : > { %1020 = vst.msk [vmem:[%s520_s11] sm:$0xf] %vm1019_vm8, %v1018_v44 }
 0x8f9 PF: > { %s1791_s24 = sld [smem:[#allocation9_spill]]  ;;  %s1035_s17 = sshll.u32 %s520_s11, 4  ;;  %s1036_s17 = int_to_ptr.vmem [resolvable:$true] %s1035_s17 }
 0x8fa   : > { %s1792_s28 = sld [smem:[#allocation7_spill]]  ;;  %s1344_s19 = scalar_lea.vmem %s1036_s17, 64 }
 0x8fb   : > { %s1794_s29 = sld [smem:[#allocation21_spill]]  ;;  %p1345_p2 = scmp.ne.s32.totalorder %s1036_s17, %s1344_s19 }
 0x8fc   : > { %s1445_s20 = smov [#allocation3]  }
 0x8fd   : > { %p1346_p4 = pnand %p1345_p2, %p1570_p3  ;;  %s1348_s25 = sshll.u32 %s1445_s20, 4  ;;  %s1349_s25 = int_to_ptr.vmem [resolvable:$false] %s1348_s25 }
 0x8fe   : > { %s1350_s21 = scalar_lea.vmem %s1349_s25, 128  ;;  %p1351_p6 = scmp.lt.s32.totalorder %s1036_s17, %s1349_s25 }
 0x8ff   : > { %s1182_s26 = sshll.u32 %s1791_s24, 6  ;;  %p1347_p5 = pneg %p1346_p4 }
 0x900   : > { %s1796_s18 = sand.u32 1, %s1792_s28   ;;  %p1352_p7 = scmp.lt.s32.totalorder %s1350_s21, %s1344_s19 }
 0x901   : > { %s1795_s13 = smov %s1794_s29  ;;  %s1033_s30 = scalar_lea.hbm %s1794_s29, %s1182_s26 }
 0x902   : > { %s1022_s16 = scalar_lea.sflag [#allocation4], %s1796_s18  ;;  %p1353_p8 = por %p1352_p7, %p1351_p6 }
 0x904   : > { %p1354_p10 = pnand %p1353_p8, %p1347_p5 }
 0x906   : > { %1357 = shalt.err (!%p1354_p10)
}
 0x907   : > { %s1358_s22 = scalar_lea.hbm %s1033_s30, 64  ;;  %s1362_s27 = scalar_lea.hbm %s1795_s13, 128 }
 0x908   : > { %p1359_p11 = scmp.ne.s32.totalorder %s1033_s30, %s1358_s22  ;;  %p1363_p0 = scmp.lt.s32.totalorder %s1033_s30, %s1795_s13 }
 0x909   : > { %p1364_p1 = scmp.lt.s32.totalorder %s1362_s27, %s1358_s22 }
 0x90a   : > { %p1360_p12 = pnand %p1359_p11, %p1570_p3 }
 0x90b   : > { %p1365_p2 = por %p1364_p1, %p1363_p0 }
 0x90c   : > { %p1361_p13 = pneg %p1360_p12 }
 0x90e   : > { %p1366_p4 = pnand %p1365_p2, %p1361_p13 }
 0x910   : > { %1369 = shalt.err (!%p1366_p4)
}
 0x911   : > { %1249 = dma.vmem_to_hbm [thread:$0]  (%p1570_p3), %s1036_s17, 64, %s1033_s30, %s1022_s16  }
 0x912 PF: > { %s1797_s26 = sld [smem:[#allocation12_spill]] }
 0x913   : > { %s1798_s12 = sld [smem:[#allocation6_spill]] }
 0x918   : > { %p1255_p5 = scmp.ge.s32.totalorder %s1797_s26, 2 }
 0x919   : > { %s1047_s29 = sand.u32 1, %s1798_s12  }
 0x91a   : > { %p1252_p6 = pnand %p1255_p5, %p1580_p9  ;;  %s1048_s18 = scalar_lea.sflag [#allocation4], %s1047_s29 }
 0x91c   : > { %p1253_p7 = pneg %p1252_p6 }
 0x91e   : > { %1403 = dma.done.wait (%p1253_p7), %s1048_s18, 64  }
 0x91f   : > { %1405 = vsyncadd (%p1253_p7), %s1048_s18, 4294967232  ;;  %s27_s20 = sadd.s32 1, %s1797_s26   ;;  %s1800_s29 = sld [smem:[#allocation7_spill]] }
 0x920   : > { %p24_p8 = scmp.ge.s32.totalorder %s27_s20, 10   ;;  %s1801_s30 = sld [smem:[#allocation8_spill]] }
 0x921   : > { %s1802_s15 = sld [smem:[#allocation17_spill]] }
 0x922   : > { %s1803_s16 = sld [smem:[#allocation10_spill]]  ;;  %26 = sbr.rel (!%p24_p8) target bundleno = 10 (0xa), region = 131 }
 0x923   : > { %s1804_s17 = sld [smem:[#allocation11_spill]] }
 0x924   : > { %s1805_s18 = sld [smem:[#allocation13_spill]] }
 0x925   : > { %s1806_s19 = sld [smem:[#allocation15_spill]] }
 0x927   :  { %1053 = vsyncpa [#allocation4], 1 }
 0x928   :  { %1055 = vsyncpa [#allocation4 + $0x1], 1 }

</bundles_post_ra>
